<compile_context>
chip_gen: v6e
topology: v6e:2x2x1
jax: 0.10.0
libtpu: 0.0.40
codegen_flags: <defaults>
</compile_context>

<pallas_src>
import functools
import math

import jax
import jax.numpy as jnp
from jax.experimental import pallas as pl
from jax.experimental.pallas import tpu as pltpu


def _round_up(x: int, m: int) -> int:
    return ((x + m - 1) // m) * m


def _vmem_capacity_bytes() -> int:
    """Per-TensorCore VMEM capacity; conservative fallback = v7x's 64 MiB."""
    try:
        return int(getattr(pltpu.get_tpu_info(), "vmem_capacity_bytes",
                           64 * 1024 * 1024))
    except Exception:
        return 64 * 1024 * 1024


# ---------------- Stage 1: support = X @ W (row-tiled) ----------------

def _support_kernel(x_ref, w_ref, sup_ref):
    sup_ref[...] = jnp.dot(
        x_ref[...], w_ref[...], preferred_element_type=jnp.float32
    ).astype(sup_ref.dtype)


# ------- Stage 2: out = adj @ support + bias (row + contraction tiled) -------

def _adj_matmul_kernel(adj_ref, sup_ref, b_ref, out_ref, *,
                       tk, compute_dtype, resident_support):
    k = pl.program_id(1)

    @pl.when(k == 0)
    def _init():
        # Bias folded into the accumulator init: added exactly once per row tile.
        out_ref[...] = jnp.broadcast_to(b_ref[...], out_ref.shape)

    if resident_support:
        # support is VMEM-resident (full array, constant index map, 1 buffer);
        # take the K-slice matching this contraction step.
        start = pl.multiple_of(k * tk, tk)
        sup_blk = sup_ref[pl.ds(start, tk), :]
    else:
        sup_blk = sup_ref[...]

    # adj streamed as f32 (no wrapper cast copy); cast per-tile for the MXU.
    # The f32 output block is constant over k, so accumulate into it directly.
    out_ref[...] += jnp.dot(adj_ref[...].astype(compute_dtype), sup_blk,
                            preferred_element_type=jnp.float32)


def graph_convolution(x, adj, weight, bias=None, *, compute_dtype=jnp.bfloat16):
    """Pallas GCN layer: adj @ (x @ weight) + bias."""
    N, f_in = x.shape
    f_out = weight.shape[1]
    out_dtype = x.dtype

    # ---- Tile sizes (big adj tiles: stage 2 is HBM-bound on adj) ----
    tm = min(512, _round_up(N, 16))        # output-row tile (>=16 for bf16)
    tk = min(1024, _round_up(N, 128))      # contraction tile (lane aligned)
    f_out_pad = _round_up(f_out, 128)      # lane-dense output stores
    # Lane-align f_in only when large and unaligned (e.g. 1433 -> 1536).
    f_in_pad = _round_up(f_in, 128) if (f_in > 128 and f_in % 128 != 0) else f_in

    n_rows_pad = _round_up(N, tm)          # padded adj rows / output rows
    n_cols_pad = _round_up(N, tk)          # padded adj cols / support rows

    vmem_budget = int(0.8 * _vmem_capacity_bytes())

    # x / W are small: cast+pad in the wrapper.  adj stays in its original
    # dtype (f32) and is padded only if the tile grid requires it.
    x_p = jnp.pad(x.astype(compute_dtype),
                  ((0, n_cols_pad - N), (0, f_in_pad - f_in)))
    w_p = jnp.pad(weight.astype(compute_dtype),
                  ((0, f_in_pad - f_in), (0, f_out_pad - f_out)))
    if (n_rows_pad, n_cols_pad) != (N, N):
        adj_p = jnp.pad(adj, ((0, n_rows_pad - N), (0, n_cols_pad - N)))
    else:
        adj_p = adj
    if bias is None:
        b_p = jnp.zeros((1, f_out_pad), jnp.float32)
    else:
        b_p = jnp.pad(bias.astype(jnp.float32).reshape(1, f_out),
                      ((0, 0), (0, f_out_pad - f_out)))

    # ---- Stage 1: support = X @ W (bf16 result, f32 accumulate) ----
    s1_est = (2 * tk * f_in_pad * 2            # x tiles (bf16), double-buffered
              + 2 * f_in_pad * f_out_pad * 2   # W (bf16)
              + 2 * tk * f_out_pad * 2)        # support tiles (bf16)
    s1_vmem = int(min(max(2 * s1_est, 16 * 1024 * 1024), vmem_budget))

    support = pl.pallas_call(
        _support_kernel,
        out_shape=jax.ShapeDtypeStruct((n_cols_pad, f_out_pad), compute_dtype),
        grid=(n_cols_pad // tk,),
        in_specs=[
            pl.BlockSpec((tk, f_in_pad), lambda i: (i, 0)),
            pl.BlockSpec((f_in_pad, f_out_pad), lambda i: (0, 0)),
        ],
        out_specs=pl.BlockSpec((tk, f_out_pad), lambda i: (i, 0)),
        compiler_params=pltpu.CompilerParams(
            dimension_semantics=("parallel",),
            vmem_limit_bytes=s1_vmem),
        cost_estimate=pl.CostEstimate(
            flops=2 * n_cols_pad * f_in_pad * f_out_pad,
            transcendentals=0,
            bytes_accessed=2 * (n_cols_pad * f_in_pad
                                + f_in_pad * f_out_pad
                                + n_cols_pad * f_out_pad),
        ),
    )(x_p, w_p)

    # ---- Stage 2: out = adj @ support + bias ----
    n_i = n_rows_pad // tm
    n_k = n_cols_pad // tk

    adj_item = adj_p.dtype.itemsize
    support_bytes = n_cols_pad * f_out_pad * 2          # bf16, 1 buffer
    tile_bytes = (2 * tm * tk * adj_item                # adj tiles, 2 buffers
                  + 2 * tm * f_out_pad * 4              # f32 output blocks
                  + 2 * f_out_pad * 4)                  # bias
    # Keep support VMEM-resident only while it leaves room for the tiles.
    resident_support = (support_bytes + tile_bytes) <= int(0.6 * vmem_budget)

    if resident_support:
        sup_spec = pl.BlockSpec((n_cols_pad, f_out_pad), lambda i, k: (0, 0),
                                pipeline_mode=pl.Buffered(1))
        sup_vmem = support_bytes
    else:
        # Fallback: stream (tk, F_out) support blocks per contraction step.
        sup_spec = pl.BlockSpec((tk, f_out_pad), lambda i, k: (k, 0))
        sup_vmem = 2 * tk * f_out_pad * 2

    est = sup_vmem + tile_bytes
    vmem_limit = int(min(max(int(1.5 * est), 32 * 1024 * 1024), vmem_budget))

    out_p = pl.pallas_call(
        functools.partial(_adj_matmul_kernel, tk=tk,
                          compute_dtype=compute_dtype,
                          resident_support=resident_support),
        out_shape=jax.ShapeDtypeStruct((n_rows_pad, f_out_pad), jnp.float32),
        grid=(n_i, n_k),
        in_specs=[
            pl.BlockSpec((tm, tk), lambda i, k: (i, k)),          # adj tile (f32)
            sup_spec,                                             # support
            pl.BlockSpec((1, f_out_pad), lambda i, k: (0, 0)),    # bias
        ],
        out_specs=pl.BlockSpec((tm, f_out_pad), lambda i, k: (i, 0)),
        compiler_params=pltpu.CompilerParams(
            dimension_semantics=("parallel", "arbitrary"),
            vmem_limit_bytes=vmem_limit,
        ),
        cost_estimate=pl.CostEstimate(
            flops=2 * n_rows_pad * n_cols_pad * f_out_pad,
            transcendentals=0,
            bytes_accessed=(adj_item * n_rows_pad * n_cols_pad   # adj (f32)
                            + 2 * n_cols_pad * f_out_pad         # support (bf16)
                            + 4 * n_rows_pad * f_out_pad         # out (f32)
                            + 4 * f_out_pad),                    # bias
        ),
    )(adj_p, support, b_p)

    return out_p[:N, :f_out].astype(out_dtype)


if __name__ == "__main__":
    # Small, module-consistent shapes: N nodes, in_features -> out_features.
    N, in_features, out_features = 64, 32, 16

    key = jax.random.PRNGKey(0)
    k_x, k_adj, k_w, k_b = jax.random.split(key, 4)

    # Parameter init mirroring reset_parameters(): stdv = 1/sqrt(out_features)
    stdv = 1.0 / math.sqrt(out_features)
    weight = jax.random.uniform(
        k_w, (in_features, out_features), jnp.float32, minval=-stdv, maxval=stdv
    )
    bias = jax.random.uniform(
        k_b, (out_features,), jnp.float32, minval=-stdv, maxval=stdv
    )

    # Node features and a dense row-normalized adjacency matrix.
    x = jax.random.normal(k_x, (N, in_features), jnp.float32)
    adj_raw = jax.random.uniform(k_adj, (N, N), jnp.float32)
    adj = adj_raw / jnp.sum(adj_raw, axis=1, keepdims=True)

    out = graph_convolution(x, adj, weight, bias)
    out = jax.block_until_ready(out)

    # Pure-JAX f32 reference of the forward semantics (kernel uses bf16
    # x/W/support with f32 accumulation, so allow a small tolerance).
    ref = adj @ (x @ weight) + bias
    assert out.shape == (N, out_features)
    assert jnp.allclose(out, ref, atol=2e-2, rtol=2e-2), "mismatch vs reference"

    print("KERNEL_OK")
</pallas_src>

<mosaic_0001>
module attributes {stable_mosaic.version = 11 : i64} {
  func.func @_support_kernel(%arg0: i32, %arg1: memref<128x32xbf16, #tpu.memory_space<vmem>>, %arg2: memref<32x128xbf16, #tpu.memory_space<vmem>>, %arg3: memref<128x128xbf16, #tpu.memory_space<vmem>>) attributes {dimension_semantics = [#tpu.dimension_semantics<parallel>], iteration_bounds = array<i64: 1>, scalar_prefetch = 0 : i64, scratch_operands = 0 : i64, tpu.core_type = #tpu.core_type<tc>, window_params = [{transform_indices = @transform_0, window_bounds = array<i64: 128, 32>}, {pipeline_mode = #tpu.pipeline_mode<synchronous>, transform_indices = @transform_1, window_bounds = array<i64: 32, 128>}, {transform_indices = @transform_2, window_bounds = array<i64: 128, 128>}]} {
    %c0 = arith.constant 0 : index
    %c0_0 = arith.constant 0 : index
    %0 = vector.load %arg1[%c0, %c0_0] : memref<128x32xbf16, #tpu.memory_space<vmem>>, vector<128x32xbf16>
    %c0_1 = arith.constant 0 : index
    %c0_2 = arith.constant 0 : index
    %1 = vector.load %arg2[%c0_1, %c0_2] : memref<32x128xbf16, #tpu.memory_space<vmem>>, vector<32x128xbf16>
    %cst = arith.constant dense<0.000000e+00> : vector<128x128xf32>
    %2 = tpu.matmul %0, %1, %cst {dimension_numbers = #tpu.dot_dimension_numbers<[1], [0], [0], [1], [0, 0, 1, 1], [], []>} : vector<128x32xbf16>, vector<32x128xbf16>, vector<128x128xf32> -> vector<128x128xf32>
    %3 = arith.truncf %2 : vector<128x128xf32> to vector<128x128xbf16>
    %c0_3 = arith.constant 0 : index
    %c0_4 = arith.constant 0 : index
    %4 = vector.load %arg3[%c0_3, %c0_4] : memref<128x128xbf16, #tpu.memory_space<vmem>>, vector<128x128xbf16>
    tpu.vector_store %arg3[%c0_3, %c0_4], %3 {strides = array<i32>} : memref<128x128xbf16, #tpu.memory_space<vmem>>, vector<128x128xbf16>,
    return
  }
  func.func @transform_0(%arg0: i32) -> (i32, i32) {
    %c0_i32 = arith.constant 0 : i32
    %c0_i32_0 = arith.constant 0 : i32
    return %arg0, %c0_i32 : i32, i32
  }
  func.func @transform_1(%arg0: i32) -> (i32, i32) {
    %c0_i32 = arith.constant 0 : i32
    %c0_i32_0 = arith.constant 0 : i32
    %c0_i32_1 = arith.constant 0 : i32
    return %c0_i32, %c0_i32_0 : i32, i32
  }
  func.func @transform_2(%arg0: i32) -> (i32, i32) {
    %c0_i32 = arith.constant 0 : i32
    %c0_i32_0 = arith.constant 0 : i32
    return %arg0, %c0_i32 : i32, i32
  }
}

</mosaic_0001>

<bundles_post_ra>
// kernel: tpu_custom_call.1
= control target key start
LH: loop header
LB: loop body
LE: loop exit
PB: predicated region body
PF: predicated region fallthrough
CT: control target
= control target key end

     0   :  { %vm85_vm0 = vcmask 261120   ;;  %s528_s0 = inlined_call_operand.vmem [shape: bf16[128,32], index: 0, kind: input, shape index: {}]   ;;  %s529_s1 = inlined_call_operand.vmem [shape: bf16[32,128], index: 1, kind: input, shape index: {}]   ;;  %s530_s2 = inlined_call_operand.hbm [shape: bf16[128,128], index: 2, kind: output, shape index: {}]  }
   0x1   :  { %v437_v0 = vld [vmem:[%s529_s1 + $0x8] sm:$0xff]   ;;  %v438_v1 = vld [vmem:[%s529_s1] sm:$0xff]   ;;  %v443_v6 = vld [vmem:[%s528_s0 + $0x10] sm:$0xff]  }
   0x2   :  { %410 = vmatprep.subr.bf16.mxu0 %v437_v0  ;;  %430 = vmatprep.subr.bf16.mxu1 %v437_v0  ;;  %v439_v2 = vld [vmem:[%s528_s0] sm:$0xff]   ;;  %v441_v4 = vld [vmem:[%s528_s0 + $0x8] sm:$0xff]   ;;  %v444_v7 = vld [vmem:[%s528_s0 + $0x30] sm:$0xff]  }
   0x3   :  { %411 = vmatpush3.bf16.msra.mxu0 %v437_v0  ;;  %432 = vmatpush3.bf16.msra.mxu1 %v437_v0  ;;  %v440_v3 = vld [vmem:[%s528_s0 + $0x20] sm:$0xff]   ;;  %v442_v5 = vld [vmem:[%s528_s0 + $0x28] sm:$0xff]  }
   0x4   :  { %412 = vmatprep.subr.bf16.mxu0 %v438_v1  ;;  %431 = vmatprep.subr.bf16.mxu1 %v438_v1 }
   0x5   :  { %414 = vmatprep.mubr.msk.bf16.mxu0 %vm85_vm0, %v439_v2  ;;  %422 = vmatprep.mubr.msk.bf16.mxu1 %vm85_vm0, %v440_v3 }
   0x7   :  { %413 = vmatpush3.bf16.msra.mxu0 %v438_v1  ;;  %433 = vmatpush3.bf16.msra.mxu1 %v438_v1 }
   0xa   :  { %415 = vmatmul.mubr.msk.bf16.vlgmr.msra.gmra.mxu0 %vm85_vm0, %v441_v4  ;;  %423 = vmatmul.mubr.msk.bf16.vlgmr.msra.gmra.mxu1 %vm85_vm0, %v442_v5 }
   0xb   :  { %7 = vsyncpa [#allocation3], 0  ;;  %418 = vmatprep.mubr.msk.bf16.mxu0 %vm85_vm0, %v443_v6  ;;  %426 = vmatprep.mubr.msk.bf16.mxu1 %vm85_vm0, %v444_v7  ;;  %v445_v8 = vld [vmem:[%s528_s0 + $0x18] sm:$0xff]  }
   0xc   :  { %v446_v9 = vld [vmem:[%s528_s0 + $0x38] sm:$0xff]   ;;  %s469_s0 = smov [#allocation2]  }
   0xd   :  { %s292_s28 = sshll.u32 %s469_s0, 4  ;;  %s293_s28 = int_to_ptr.vmem [resolvable:$true] %s292_s28 }
   0xe   :  { %s447_s29 = scalar_lea.vmem %s293_s28, 1024  ;;  %p452_p1 = scmp.lt.s32.totalorder %s293_s28, %s293_s28 }
   0xf   :  { %p448_p0 = scmp.ne.s32.totalorder %s293_s28, %s447_s29  ;;  %p453_p2 = scmp.lt.s32.totalorder %s447_s29, %s447_s29 }
  0x11   :  { %p454_p3 = por %p453_p2, %p452_p1 }
  0x12   :  { %419 = vmatmul.mubr.msk.bf16.gmra.mxu0 %vm85_vm0, %v445_v8  ;;  %427 = vmatmul.mubr.msk.bf16.gmra.mxu1 %vm85_vm0, %v446_v9 }
  0x13   :  { %p455_p4 = pnand %p454_p3, %p448_p0 }
  0xca   :  { %v416_v10 = vpop.f32.mrf.mxu0  ;;  %v424_v11 = vpop.f32.mrf.mxu1 }
  0xcc   :  { %v144_v12 = vpop.f32.mrf.mxu0  ;;  %v176_v13 = vpop.f32.mrf.mxu1 }
  0xce   :  { %v417_v14 = vpop.f32.mrf.mxu0  ;;  %v425_v15 = vpop.f32.mrf.mxu1 }
  0xcf   :  { %v361_v16 = vpack.c.bf16 %v417_v14, %v416_v10  ;;  %v381_v17 = vpack.c.bf16 %v425_v15, %v424_v11 }
  0xd0   :  { %v147_v18 = vpop.f32.mrf.mxu0  ;;  %v179_v19 = vpop.f32.mrf.mxu1 }
  0xd1   :  { %393 = vst [vmem:[#allocation2 + $0x8] sm:$0xff] %v361_v16   ;;  %397 = vst [vmem:[#allocation2 + $0x28] sm:$0xff] %v381_v17   ;;  %v356_v20 = vpack.c.bf16 %v147_v18, %v144_v12  ;;  %v376_v21 = vpack.c.bf16 %v179_v19, %v176_v13 }
  0xd2   :  { %v420_v22 = vpop.f32.mrf.mxu0  ;;  %v428_v23 = vpop.f32.mrf.mxu1 }
  0xd3   :  { %357 = vst [vmem:[#allocation2] sm:$0xff] %v356_v20   ;;  %396 = vst [vmem:[#allocation2 + $0x20] sm:$0xff] %v376_v21  }
  0xd4   :  { %v160_v24 = vpop.f32.mrf.mxu0  ;;  %v192_v25 = vpop.f32.mrf.mxu1 }
  0xd6   :  { %v421_v26 = vpop.f32.mrf.mxu0  ;;  %v429_v27 = vpop.f32.mrf.mxu1 }
  0xd7   :  { %v371_v28 = vpack.c.bf16 %v421_v26, %v420_v22  ;;  %v391_v29 = vpack.c.bf16 %v429_v27, %v428_v23 }
  0xd8   :  { %v163_v30 = vpop.f32.mrf.mxu0  ;;  %v195_v31 = vpop.f32.mrf.mxu1 }
  0xd9   :  { %395 = vst [vmem:[#allocation2 + $0x18] sm:$0xff] %v371_v28   ;;  %399 = vst [vmem:[#allocation2 + $0x38] sm:$0xff] %v391_v29   ;;  %v366_v32 = vpack.c.bf16 %v163_v30, %v160_v24  ;;  %v386_v33 = vpack.c.bf16 %v195_v31, %v192_v25 }
  0xdb   :  { %394 = vst [vmem:[#allocation2 + $0x10] sm:$0xff] %v366_v32   ;;  %398 = vst [vmem:[#allocation2 + $0x30] sm:$0xff] %v386_v33  }
  0xdc   :  { %458 = shalt.err (!%p455_p4)
}
  0xdd   :  { %s470_s30 = smov 64   ;;  %s471_s3 = smov 4  }
  0xde   :  { %298 = dma.vmem_to_hbm [thread:$0]  %s293_s28, 1024, %s530_s2, [#allocation3], %s470_s30, %s470_s30, %s471_s3  }
  0xdf   :  { %467 = dma.done.wait [#allocation3], 1024  }
  0xe0   :  { %468 = vsyncadd [#allocation3], 4294966272 }
  0xe1   :  { %302 = vsyncpa [#allocation3], 1 }

</bundles_post_ra>
